<compile_context>
chip_gen: v7x
topology: tpu7x:2x2x1
jax: 0.10.0
libtpu: 0.0.40
codegen_flags: <defaults>
</compile_context>

<pallas_src>
import jax
import jax.numpy as jnp
from jax.experimental import pallas as pl
from jax.experimental.pallas import tpu as pltpu

LANES = 128
SUB = 8
GROUPS_PER_BLOCK_MAX = 128   # 128 groups * 8 sublanes = 1024 rows per block
PAD_LOGIT = -30.0            # exp underflows cleanly; sigmoid/softplus ~ 1e-13


def _cedice_kernel(p_ref, t_ref, o_ref, acc_ref):
    j = pl.program_id(1)

    @pl.when(j == 0)
    def _():
        acc_ref[...] = jnp.zeros_like(acc_ref)

    x = p_ref[...].astype(jnp.float32)   # (G, 8, 128)
    t = t_ref[...].astype(jnp.float32)

    # One shared exp for both the stable-BCE softplus and the sigmoid.
    e = jnp.exp(-jnp.abs(x))
    bce = jnp.maximum(x, 0.0) - x * t + jnp.log1p(e)
    inv = 1.0 / (1.0 + e)                # sigmoid(|x|)
    sig = jnp.where(x >= 0.0, inv, e * inv)

    # Per-(sublane, lane) partial sums only; cross-lane reduce deferred.
    acc_ref[0] += jnp.sum(bce, axis=0)
    acc_ref[1] += jnp.sum(sig, axis=0)
    acc_ref[2] += jnp.sum(t, axis=0)
    acc_ref[3] += jnp.sum(sig * t, axis=0)

    @pl.when(j == pl.num_programs(1) - 1)
    def _():
        o_ref[0] = acc_ref[...]


def cedice_loss(prediction, target, bce_weight=0.5):
    """Pallas TPU implementation of CEDICE.forward (returns scalar f32)."""
    assert prediction.shape == target.shape
    n_total = int(prediction.size)
    assert n_total > 0

    grain = SUB * LANES
    total_groups = pl.cdiv(n_total, grain)
    g_blk = min(GROUPS_PER_BLOCK_MAX, total_groups)
    steps_total = pl.cdiv(total_groups, g_blk)
    # Split the row range across 2 chunks (v7x megacore) once the input is
    # large enough that the extra per-chunk padding stays below ~25%.
    n_chunks = 2 if steps_total >= 4 else 1
    steps = pl.cdiv(steps_total, n_chunks)
    groups_pad = n_chunks * steps * g_blk
    n_pad = groups_pad * grain

    p_flat = jnp.ravel(prediction)
    t_flat = jnp.ravel(target)
    pad = n_pad - n_total
    if pad:
        # Pad logits with a large negative constant and targets with zero so
        # padded elements contribute ~1e-13 each to every sum — removes any
        # per-step validity mask from the hot loop. (Skipped entirely when the
        # element count already divides the block grain.)
        p_flat = jnp.pad(p_flat, (0, pad), constant_values=PAD_LOGIT)
        t_flat = jnp.pad(t_flat, (0, pad), constant_values=0)

    p3 = p_flat.reshape(groups_pad, SUB, LANES)
    t3 = t_flat.reshape(groups_pad, SUB, LANES)

    partials = pl.pallas_call(
        _cedice_kernel,
        out_shape=jax.ShapeDtypeStruct((n_chunks, 4, SUB, LANES), jnp.float32),
        grid_spec=pltpu.PrefetchScalarGridSpec(
            num_scalar_prefetch=0,
            grid=(n_chunks, steps),
            in_specs=[
                pl.BlockSpec((g_blk, SUB, LANES),
                             lambda c, j: (c * steps + j, 0, 0)),
                pl.BlockSpec((g_blk, SUB, LANES),
                             lambda c, j: (c * steps + j, 0, 0)),
            ],
            out_specs=pl.BlockSpec((1, 4, SUB, LANES),
                                   lambda c, j: (c, 0, 0, 0)),
            scratch_shapes=[pltpu.VMEM((4, SUB, LANES), jnp.float32)],
        ),
        compiler_params=pltpu.CompilerParams(
            dimension_semantics=("parallel", "arbitrary"),
        ),
    )(p3, t3)

    # Final cross-lane reduction + scalar fuse (tiny; done outside the kernel).
    sums = jnp.sum(partials, axis=(0, 2, 3))   # [sum_bce, sum_sig, sum_tgt, sum_inter]
    smooth = 1.0
    bce_mean = sums[0] / jnp.float32(n_total)
    dice = 1.0 - (2.0 * sums[3] + smooth) / (sums[1] + sums[2] + smooth)
    return bce_mean * bce_weight + dice * (1.0 - bce_weight)


def _reference(prediction, target, bce_weight=0.5):
    x = prediction.astype(jnp.float32)
    t = target.astype(jnp.float32)
    bce = jnp.mean(jnp.maximum(x, 0.0) - x * t + jnp.log1p(jnp.exp(-jnp.abs(x))))
    p = jax.nn.sigmoid(x)
    smooth = 1.0
    inter = jnp.sum(p * t)
    dice = 1.0 - (2.0 * inter + smooth) / (jnp.sum(p) + jnp.sum(t) + smooth)
    return bce * bce_weight + dice * (1.0 - bce_weight)


if __name__ == "__main__":
    key = jax.random.PRNGKey(0)
    k1, k2 = jax.random.split(key)
    # NCHW: batch=2, channels=4, spatial=16x16
    prediction = jax.random.normal(k1, (2, 4, 16, 16), dtype=jnp.float32)
    target = (jax.random.uniform(k2, (2, 4, 16, 16)) > 0.5).astype(jnp.float32)

    loss = cedice_loss(prediction, target, bce_weight=0.5)
    loss = jax.block_until_ready(loss)

    ref = _reference(prediction, target, 0.5)
    assert jnp.allclose(loss, ref, rtol=1e-5, atol=1e-5), (loss, ref)
    print("KERNEL_OK")
</pallas_src>

<mosaic_0001>
module attributes {stable_mosaic.version = 11 : i64} {
  func.func @_cedice_kernel(%arg0: i32, %arg1: i32, %arg2: memref<2x8x128xf32, #tpu.memory_space<vmem>>, %arg3: memref<2x8x128xf32, #tpu.memory_space<vmem>>, %arg4: memref<1x4x8x128xf32, #tpu.memory_space<vmem>>, %arg5: memref<4x8x128xf32, #tpu.memory_space<vmem>>) attributes {dimension_semantics = [#tpu.dimension_semantics<parallel>, #tpu.dimension_semantics<arbitrary>], iteration_bounds = array<i64: 1, 1>, scalar_prefetch = 0 : i64, scratch_operands = 1 : i64, tpu.core_type = #tpu.core_type<tc>, window_params = [{transform_indices = @transform_0, window_bounds = array<i64: 2, 8, 128>}, {transform_indices = @transform_1, window_bounds = array<i64: 2, 8, 128>}, {transform_indices = @transform_2, window_bounds = array<i64: 1, 4, 8, 128>}]} {
    %c0_i32 = arith.constant 0 : i32
    %0 = arith.cmpi eq, %arg1, %c0_i32 : i32
    %1 = arith.extui %0 : i1 to i32
    %c0_i32_0 = arith.constant 0 : i32
    %2 = arith.cmpi ne, %1, %c0_i32_0 : i32
    scf.if %2 {
      %cst_37 = arith.constant 0.000000e+00 : f32
      %55 = vector.broadcast %cst_37 : f32 to vector<4x8x128xf32>
      %c0_38 = arith.constant 0 : index
      %c0_39 = arith.constant 0 : index
      %c0_40 = arith.constant 0 : index
      %56 = vector.load %arg5[%c0_38, %c0_39, %c0_40] : memref<4x8x128xf32, #tpu.memory_space<vmem>>, vector<4x8x128xf32>
      tpu.vector_store %arg5[%c0_38, %c0_39, %c0_40], %55 {strides = array<i32>} : memref<4x8x128xf32, #tpu.memory_space<vmem>>, vector<4x8x128xf32>,
    } else {
    }
    %c0 = arith.constant 0 : index
    %c0_1 = arith.constant 0 : index
    %c0_2 = arith.constant 0 : index
    %3 = vector.load %arg2[%c0, %c0_1, %c0_2] : memref<2x8x128xf32, #tpu.memory_space<vmem>>, vector<2x8x128xf32>
    %c0_3 = arith.constant 0 : index
    %c0_4 = arith.constant 0 : index
    %c0_5 = arith.constant 0 : index
    %4 = vector.load %arg3[%c0_3, %c0_4, %c0_5] : memref<2x8x128xf32, #tpu.memory_space<vmem>>, vector<2x8x128xf32>
    %5 = math.absf %3 : vector<2x8x128xf32>
    %cst = arith.constant 0.000000e+00 : f32
    %6 = vector.broadcast %cst : f32 to vector<2x8x128xf32>
    %7 = arith.subf %6, %5 : vector<2x8x128xf32>
    %8 = math.exp %7 : vector<2x8x128xf32>
    %cst_6 = arith.constant 0.000000e+00 : f32
    %9 = vector.broadcast %cst_6 : f32 to vector<2x8x128xf32>
    %10 = arith.maximumf %3, %9 : vector<2x8x128xf32>
    %11 = arith.mulf %3, %4 : vector<2x8x128xf32>
    %12 = arith.subf %10, %11 : vector<2x8x128xf32>
    %13 = math.log1p %8 : vector<2x8x128xf32>
    %14 = arith.addf %12, %13 : vector<2x8x128xf32>
    %cst_7 = arith.constant 1.000000e+00 : f32
    %15 = vector.broadcast %cst_7 : f32 to vector<2x8x128xf32>
    %16 = arith.addf %15, %8 : vector<2x8x128xf32>
    %cst_8 = arith.constant 1.000000e+00 : f32
    %17 = vector.broadcast %cst_8 : f32 to vector<2x8x128xf32>
    %18 = arith.divf %17, %16 : vector<2x8x128xf32>
    %cst_9 = arith.constant 0.000000e+00 : f32
    %19 = vector.broadcast %cst_9 : f32 to vector<2x8x128xf32>
    %20 = arith.cmpf oge, %3, %19 : vector<2x8x128xf32>
    %21 = arith.mulf %8, %18 : vector<2x8x128xf32>
    %22 = arith.select %20, %18, %21 : vector<2x8x128xi1>, vector<2x8x128xf32>
    %c0_10 = arith.constant 0 : index
    %c0_11 = arith.constant 0 : index
    %c0_12 = arith.constant 0 : index
    %23 = vector.load %arg5[%c0_10, %c0_11, %c0_12] : memref<4x8x128xf32, #tpu.memory_space<vmem>>, vector<1x8x128xf32>
    %24 = vector.shape_cast %23 : vector<1x8x128xf32> to vector<8x128xf32>
    %cst_13 = arith.constant dense<0.000000e+00> : vector<8x128xf32>
    %25 = vector.multi_reduction <add>, %14, %cst_13 [0] : vector<2x8x128xf32> to vector<8x128xf32>
    %26 = arith.addf %24, %25 : vector<8x128xf32>
    %c0_14 = arith.constant 0 : index
    %c0_15 = arith.constant 0 : index
    %c0_16 = arith.constant 0 : index
    %27 = vector.load %arg5[%c0_14, %c0_15, %c0_16] : memref<4x8x128xf32, #tpu.memory_space<vmem>>, vector<1x8x128xf32>
    %28 = vector.shape_cast %27 : vector<1x8x128xf32> to vector<8x128xf32>
    %29 = vector.shape_cast %26 : vector<8x128xf32> to vector<1x8x128xf32>
    tpu.vector_store %arg5[%c0_14, %c0_15, %c0_16], %29 {strides = array<i32>} : memref<4x8x128xf32, #tpu.memory_space<vmem>>, vector<1x8x128xf32>,
    %c1 = arith.constant 1 : index
    %c0_17 = arith.constant 0 : index
    %c0_18 = arith.constant 0 : index
    %30 = vector.load %arg5[%c1, %c0_17, %c0_18] : memref<4x8x128xf32, #tpu.memory_space<vmem>>, vector<1x8x128xf32>
    %31 = vector.shape_cast %30 : vector<1x8x128xf32> to vector<8x128xf32>
    %cst_19 = arith.constant dense<0.000000e+00> : vector<8x128xf32>
    %32 = vector.multi_reduction <add>, %22, %cst_19 [0] : vector<2x8x128xf32> to vector<8x128xf32>
    %33 = arith.addf %31, %32 : vector<8x128xf32>
    %c1_20 = arith.constant 1 : index
    %c0_21 = arith.constant 0 : index
    %c0_22 = arith.constant 0 : index
    %34 = vector.load %arg5[%c1_20, %c0_21, %c0_22] : memref<4x8x128xf32, #tpu.memory_space<vmem>>, vector<1x8x128xf32>
    %35 = vector.shape_cast %34 : vector<1x8x128xf32> to vector<8x128xf32>
    %36 = vector.shape_cast %33 : vector<8x128xf32> to vector<1x8x128xf32>
    tpu.vector_store %arg5[%c1_20, %c0_21, %c0_22], %36 {strides = array<i32>} : memref<4x8x128xf32, #tpu.memory_space<vmem>>, vector<1x8x128xf32>,
    %c2 = arith.constant 2 : index
    %c0_23 = arith.constant 0 : index
    %c0_24 = arith.constant 0 : index
    %37 = vector.load %arg5[%c2, %c0_23, %c0_24] : memref<4x8x128xf32, #tpu.memory_space<vmem>>, vector<1x8x128xf32>
    %38 = vector.shape_cast %37 : vector<1x8x128xf32> to vector<8x128xf32>
    %cst_25 = arith.constant dense<0.000000e+00> : vector<8x128xf32>
    %39 = vector.multi_reduction <add>, %4, %cst_25 [0] : vector<2x8x128xf32> to vector<8x128xf32>
    %40 = arith.addf %38, %39 : vector<8x128xf32>
    %c2_26 = arith.constant 2 : index
    %c0_27 = arith.constant 0 : index
    %c0_28 = arith.constant 0 : index
    %41 = vector.load %arg5[%c2_26, %c0_27, %c0_28] : memref<4x8x128xf32, #tpu.memory_space<vmem>>, vector<1x8x128xf32>
    %42 = vector.shape_cast %41 : vector<1x8x128xf32> to vector<8x128xf32>
    %43 = vector.shape_cast %40 : vector<8x128xf32> to vector<1x8x128xf32>
    tpu.vector_store %arg5[%c2_26, %c0_27, %c0_28], %43 {strides = array<i32>} : memref<4x8x128xf32, #tpu.memory_space<vmem>>, vector<1x8x128xf32>,
    %c3 = arith.constant 3 : index
    %c0_29 = arith.constant 0 : index
    %c0_30 = arith.constant 0 : index
    %44 = vector.load %arg5[%c3, %c0_29, %c0_30] : memref<4x8x128xf32, #tpu.memory_space<vmem>>, vector<1x8x128xf32>
    %45 = vector.shape_cast %44 : vector<1x8x128xf32> to vector<8x128xf32>
    %46 = arith.mulf %22, %4 : vector<2x8x128xf32>
    %cst_31 = arith.constant dense<0.000000e+00> : vector<8x128xf32>
    %47 = vector.multi_reduction <add>, %46, %cst_31 [0] : vector<2x8x128xf32> to vector<8x128xf32>
    %48 = arith.addf %45, %47 : vector<8x128xf32>
    %c3_32 = arith.constant 3 : index
    %c0_33 = arith.constant 0 : index
    %c0_34 = arith.constant 0 : index
    %49 = vector.load %arg5[%c3_32, %c0_33, %c0_34] : memref<4x8x128xf32, #tpu.memory_space<vmem>>, vector<1x8x128xf32>
    %50 = vector.shape_cast %49 : vector<1x8x128xf32> to vector<8x128xf32>
    %51 = vector.shape_cast %48 : vector<8x128xf32> to vector<1x8x128xf32>
    tpu.vector_store %arg5[%c3_32, %c0_33, %c0_34], %51 {strides = array<i32>} : memref<4x8x128xf32, #tpu.memory_space<vmem>>, vector<1x8x128xf32>,
    %c0_i32_35 = arith.constant 0 : i32
    %52 = arith.cmpi eq, %arg1, %c0_i32_35 : i32
    %53 = arith.extui %52 : i1 to i32
    %c0_i32_36 = arith.constant 0 : i32
    %54 = arith.cmpi ne, %53, %c0_i32_36 : i32
    scf.if %54 {
      %c0_37 = arith.constant 0 : index
      %c0_38 = arith.constant 0 : index
      %c0_39 = arith.constant 0 : index
      %55 = vector.load %arg5[%c0_37, %c0_38, %c0_39] : memref<4x8x128xf32, #tpu.memory_space<vmem>>, vector<4x8x128xf32>
      %c0_40 = arith.constant 0 : index
      %c0_41 = arith.constant 0 : index
      %c0_42 = arith.constant 0 : index
      %c0_43 = arith.constant 0 : index
      %56 = vector.load %arg4[%c0_40, %c0_41, %c0_42, %c0_43] : memref<1x4x8x128xf32, #tpu.memory_space<vmem>>, vector<1x4x8x128xf32>
      %57 = vector.shape_cast %56 : vector<1x4x8x128xf32> to vector<4x8x128xf32>
      %58 = vector.shape_cast %55 : vector<4x8x128xf32> to vector<1x4x8x128xf32>
      tpu.vector_store %arg4[%c0_40, %c0_41, %c0_42, %c0_43], %58 {strides = array<i32>} : memref<1x4x8x128xf32, #tpu.memory_space<vmem>>, vector<1x4x8x128xf32>,
    } else {
    }
    return
  }
  func.func @transform_0(%arg0: i32, %arg1: i32) -> (i32, i32, i32) {
    %c1_i32 = arith.constant 1 : i32
    %0 = arith.muli %arg0, %c1_i32 : i32
    %1 = arith.addi %0, %arg1 : i32
    %c0_i32 = arith.constant 0 : i32
    %c0_i32_0 = arith.constant 0 : i32
    %c0_i32_1 = arith.constant 0 : i32
    return %1, %c0_i32, %c0_i32_0 : i32, i32, i32
  }
  func.func @transform_1(%arg0: i32, %arg1: i32) -> (i32, i32, i32) {
    %c1_i32 = arith.constant 1 : i32
    %0 = arith.muli %arg0, %c1_i32 : i32
    %1 = arith.addi %0, %arg1 : i32
    %c0_i32 = arith.constant 0 : i32
    %c0_i32_0 = arith.constant 0 : i32
    %c0_i32_1 = arith.constant 0 : i32
    return %1, %c0_i32, %c0_i32_0 : i32, i32, i32
  }
  func.func @transform_2(%arg0: i32, %arg1: i32) -> (i32, i32, i32, i32) {
    %c0_i32 = arith.constant 0 : i32
    %c0_i32_0 = arith.constant 0 : i32
    %c0_i32_1 = arith.constant 0 : i32
    %c0_i32_2 = arith.constant 0 : i32
    return %arg0, %c0_i32, %c0_i32_0, %c0_i32_1 : i32, i32, i32, i32
  }
}

</mosaic_0001>

<bundles_post_ra>
// kernel: tpu_custom_call.1
= control target key start
LH: loop header
LB: loop body
LE: loop exit
PB: predicated region body
PF: predicated region fallthrough
CT: control target
= control target key end

     0   :  { %7 = vsyncpa [#allocation4], 0  ;;  %s314_s0 = inlined_call_operand.hbm [shape: f32[2,8,128], index: 0, kind: input, shape index: {}]   ;;  %s315_s1 = inlined_call_operand.hbm [shape: f32[2,8,128], index: 1, kind: input, shape index: {}]   ;;  %s316_s2 = inlined_call_operand.hbm [shape: f32[1,4,8,128], index: 2, kind: output, shape index: {}]  }
   0x1   :  { %8 = vsyncpa [#allocation7], 0 }
   0x2   :  { %9 = vsyncpa [#allocation5], 0  ;;  %s249_s9 = smov [#allocation3]   ;;  %s177_s13 = scalar_lea.hbm %s314_s0, 256 }
   0x3   :  { %s19_s10 = sshll.u32 %s249_s9, 4  ;;  %p178_p0 = scmp.ne.s32.totalorder %s314_s0, %s177_s13  ;;  %s20_s10 = int_to_ptr.vmem [resolvable:$true] %s19_s10 }
   0x4   :  { %p181_p1 = scmp.lt.u32.totalorder %s177_s13, %s314_s0 }
   0x6   :  { %p183_p2 = pnand %p181_p1, %p178_p0 }
   0x8   :  { %186 = shalt.err (!%p183_p2)
}
   0x9   :  { %s187_s18 = scalar_lea.vmem %s20_s10, 256  ;;  %p192_p4 = scmp.lt.s32.totalorder %s20_s10, %s20_s10 }
   0xa   :  { %p188_p3 = scmp.ne.s32.totalorder %s20_s10, %s187_s18  ;;  %p193_p5 = scmp.lt.s32.totalorder %s187_s18, %s187_s18 }
   0xc   :  { %p194_p6 = por %p193_p5, %p192_p4 }
   0xe   :  { %p195_p7 = pnand %p194_p6, %p188_p3 }
  0x10   :  { %198 = shalt.err (!%p195_p7)
}
  0x11   :  { %s250_s19 = smov 128   ;;  %s251_s20 = smov 8  }
  0x12   :  { %25 = dma.hbm_to_vmem [thread:$0]  %s314_s0, 256, %s20_s10, [#allocation4], %s250_s19, %s250_s19, %s251_s20  }
  0x13   :  { %s252_s23 = smov [#allocation6]   ;;  %s199_s27 = scalar_lea.hbm %s315_s1, 256 }
  0x14   :  { %s35_s24 = sshll.u32 %s252_s23, 4  ;;  %p200_p8 = scmp.ne.s32.totalorder %s315_s1, %s199_s27  ;;  %s36_s24 = int_to_ptr.vmem [resolvable:$true] %s35_s24 }
  0x15   :  { %p203_p9 = scmp.lt.u32.totalorder %s199_s27, %s315_s1 }
  0x17   :  { %p205_p10 = pnand %p203_p9, %p200_p8 }
  0x19   :  { %208 = shalt.err (!%p205_p10)
}
  0x1a   :  { %s209_s4 = scalar_lea.vmem %s36_s24, 256  ;;  %p214_p12 = scmp.lt.s32.totalorder %s36_s24, %s36_s24 }
  0x1b   :  { %p210_p11 = scmp.ne.s32.totalorder %s36_s24, %s209_s4  ;;  %p215_p13 = scmp.lt.s32.totalorder %s209_s4, %s209_s4 }
  0x1d   :  { %p216_p0 = por %p215_p13, %p214_p12 }
  0x1f   :  { %p217_p1 = pnand %p216_p0, %p210_p11 }
  0x21   :  { %220 = shalt.err (!%p217_p1)
}
  0x22   :  { %41 = dma.hbm_to_vmem [thread:$0]  %s315_s1, 256, %s36_s24, [#allocation7], %s250_s19, %s250_s19, %s251_s20  }
  0x23   :  { %243 = dma.done.wait [#allocation4], 256  }
  0x24   :  { %244 = vsyncadd [#allocation4], 4294967040 }
  0x25   :  { %245 = dma.done.wait [#allocation7], 256  }
  0x26   :  { %246 = vsyncadd [#allocation7], 4294967040  ;;  %v60_v0 = vld [vmem:[#allocation3] sm:$0xff]  ;;  %v61_v1 = vld [vmem:[#allocation3 + $0x8] sm:$0xff]  ;;  %s253_s1 = smov [#allocation8]  }
  0x27   :  { %v64_v2 = vand.u32 2147483647, %v60_v0  ;;  %v65_v3 = vand.u32 2147483647, %v61_v1  ;;  %v62_v4 = vld [vmem:[#allocation6] sm:$0xff]  ;;  %v63_v5 = vld [vmem:[#allocation6 + $0x8] sm:$0xff] }
  0x28   :  { %v121_v8 = vadd.f32 %v63_v5, %v62_v4  ;;  %v72_v18 = vmax.f32 %v60_v0, 0.0  ;;  %v74_v19 = vmul.f32 %v62_v4, %v60_v0  ;;  %v73_v22 = vmax.f32 %v61_v1, 0.0  ;;  %s147_s6 = sshll.u32 %s253_s1, 4  ;;  %s148_s6 = int_to_ptr.vmem [resolvable:$true] %s147_s6 }
  0x29   :  { %v66_v6 = vsub.f32 0.0, %v64_v2  ;;  %v67_v7 = vsub.f32 0.0, %v65_v3  ;;  %v75_v23 = vmul.f32 %v63_v5, %v61_v1  ;;  %vm104_vm2 = vcmp.ge.f32.partialorder %v60_v0, 0.0  ;;  %s221_s7 = scalar_lea.vmem %s148_s6, 512  ;;  %p226_p3 = scmp.lt.s32.totalorder %s148_s6, %s148_s6 }
  0x2a   :  { %140 = vst [vmem:[#allocation8 + $0x10] sm:$0xff] %v121_v8  ;;  %v76_v27 = vsub.f32 %v72_v18, %v74_v19  ;;  %vm105_vm3 = vcmp.ge.f32.partialorder %v61_v1, 0.0  ;;  %p222_p2 = scmp.ne.s32.totalorder %s148_s6, %s221_s7  ;;  %p227_p4 = scmp.lt.s32.totalorder %s221_s7, %s221_s7 }
  0x2b   :  { %v68_v9 = vmul.f32 1.442695, %v66_v6  ;;  %v70_v10 = vmul.f32 1.442695, %v67_v7  ;;  %v77_v30 = vsub.f32 %v73_v22, %v75_v23 }
  0x2c   :  { %p228_p5 = por %p227_p4, %p226_p3 }
  0x2d   :  { %165 = vpow2.f32 %v68_v9 }
  0x2e   :  { %167 = vpow2.f32 %v70_v10  ;;  %p229_p6 = pnand %p228_p5, %p222_p2 }
  0x37   :  { %v166_v11 = vpop.eup %165 }
  0x38   :  { %v168_v12 = vpop.eup %167  ;;  %v78_v13 = vadd.f32 1.0, %v166_v11  ;;  %v81_v15 = vmul.f32 -0.5, %v166_v11  ;;  %v84_v20 = vand.u32 2147483647, %v166_v11 }
  0x39   :  { %v87_v14 = vadd.f32 1.0, %v168_v12  ;;  %v90_v16 = vmul.f32 -0.5, %v168_v12  ;;  %v93_v24 = vand.u32 2147483647, %v168_v12 }
  0x3a   :  { %169 = vlog2.f32 %v78_v13  ;;  %v82_v17 = vadd.f32 1.0, %v81_v15  ;;  %vm85_vm0 = vcmp.lt.f32.partialorder %v84_v20, 0.0004427343 }
  0x3b   :  { %171 = vlog2.f32 %v87_v14  ;;  %v91_v21 = vadd.f32 1.0, %v90_v16  ;;  %vm94_vm1 = vcmp.lt.f32.partialorder %v93_v24, 0.0004427343 }
  0x3c   :  { %173 = vrcp.f32 %v78_v13  ;;  %v83_v25 = vmul.f32 %v166_v11, %v82_v17 }
  0x3d   :  { %175 = vrcp.f32 %v87_v14  ;;  %v92_v28 = vmul.f32 %v168_v12, %v91_v21 }
  0x44   :  { %v170_v26 = vpop.eup %169 }
  0x45   :  { %v172_v29 = vpop.eup %171  ;;  %v80_v31 = vmul.f32 0.6931472, %v170_v26 }
  0x46   :  { %v174_v32 = vpop.eup %173  ;;  %v89_v33 = vmul.f32 0.6931472, %v172_v29 }
  0x47   :  { %v176_v34 = vpop.eup %175  ;;  %v86_v35 = vsel %vm85_vm0, %v83_v25, %v80_v31  ;;  %v106_v36 = vmul.f32 %v174_v32, %v166_v11 }
  0x48   :  { %v95_v37 = vsel %vm94_vm1, %v92_v28, %v89_v33  ;;  %v96_v38 = vadd.f32 %v86_v35, %v76_v27  ;;  %v107_v39 = vmul.f32 %v176_v34, %v168_v12 }
  0x49   :  { %v97_v40 = vadd.f32 %v95_v37, %v77_v30  ;;  %v108_v41 = vsel %vm104_vm2, %v174_v32, %v106_v36 }
  0x4a   :  { %v109_v42 = vsel %vm105_vm3, %v176_v34, %v107_v39  ;;  %v126_v43 = vmul.f32 %v108_v41, %v62_v4 }
  0x4b   :  { %v111_v44 = vadd.f32 %v97_v40, %v96_v38  ;;  %v116_v45 = vadd.f32 %v109_v42, %v108_v41  ;;  %v127_v46 = vmul.f32 %v109_v42, %v63_v5 }
  0x4d   :  { %138 = vst [vmem:[#allocation8] sm:$0xff] %v111_v44  ;;  %139 = vst [vmem:[#allocation8 + $0x8] sm:$0xff] %v116_v45  ;;  %v128_v47 = vadd.f32 %v127_v46, %v126_v43 }
  0x4f   :  { %141 = vst [vmem:[#allocation8 + $0x18] sm:$0xff] %v128_v47 }
  0x50   :  { %232 = shalt.err (!%p229_p6)
}
  0x51   :  { %s233_s10 = scalar_lea.hbm %s316_s2, 512 }
  0x52   :  { %p234_p7 = scmp.ne.s32.totalorder %s316_s2, %s233_s10  ;;  %p237_p8 = scmp.lt.u32.totalorder %s233_s10, %s316_s2 }
  0x54   :  { %p239_p9 = pnand %p237_p8, %p234_p7 }
  0x56   :  { %242 = shalt.err (!%p239_p9)
}
  0x57   :  { %153 = dma.vmem_to_hbm [thread:$0]  %s148_s6, 512, %s316_s2, [#allocation5], %s250_s19, %s250_s19, %s251_s20  }
  0x58   :  { %247 = dma.done.wait [#allocation5], 512  }
  0x59   :  { %248 = vsyncadd [#allocation5], 4294966784 }
  0x5a   :  { %157 = vsyncpa [#allocation4], 1 }
  0x5b   :  { %158 = vsyncpa [#allocation7], 1 }
  0x5c   :  { %159 = vsyncpa [#allocation5], 1 }

</bundles_post_ra>
